<compile_context>
chip_gen: v5e
topology: v5e:2x2
jax: 0.10.0
libtpu: 0.0.40
codegen_flags: <defaults>
</compile_context>

<pallas_src>
import jax
import jax.numpy as jnp
from jax.experimental import pallas as pl
from jax.experimental.pallas import tpu as pltpu

EPS = 1e-5


# ---------------------------------------------------------------------------
# AvgPool 2x2 / stride 2  (single input, no strided HBM pre-copies)
# ---------------------------------------------------------------------------
def avgpool2x2(x):
    # TODO(synk): ceil_mode partial windows for odd H/W are not implemented
    # (DownBlock is exercised with even sizes, matching PyTorch exactly).
    N, H0, W0, C = x.shape
    Ho, Wo = H0 // 2, W0 // 2
    xr = x.reshape(N, Ho, 2, Wo, 2 * C)                 # free row-major view

    def kernel(x_ref, o_ref):
        xb = x_ref[0].astype(jnp.float32)               # (Ho, 2, Wo, 2C)
        s = xb[:, 0] + xb[:, 1]                         # rows 2i, 2i+1 -> (Ho, Wo, 2C)
        o = 0.25 * (s[..., :C] + s[..., C:])            # cols 2j, 2j+1 -> (Ho, Wo, C)
        o_ref[0] = o.astype(o_ref.dtype)

    return pl.pallas_call(
        kernel,
        out_shape=jax.ShapeDtypeStruct((N, Ho, Wo, C), x.dtype),
        grid=(N,),
        in_specs=[pl.BlockSpec((1, Ho, 2, Wo, 2 * C),
                               lambda n: (n, 0, 0, 0, 0))],
        out_specs=pl.BlockSpec((1, Ho, Wo, C), lambda n: (n, 0, 0, 0)),
        compiler_params=pltpu.CompilerParams(dimension_semantics=("parallel",)),
    )(xr)


# ---------------------------------------------------------------------------
# Fused layer kernel: [BN affine + ReLU of previous layer] -> 3x3 conv + bias
#                     -> store pre-BN output + per-batch BN partial stats
# ---------------------------------------------------------------------------
def conv3x3_bn_fused(x, w, b, in_scale=None, in_shift=None):
    N, H, W, Cin = x.shape
    Cout = w.shape[-1]
    Hp, Wp = H + 2, W + 2
    apply_act = in_scale is not None

    xp = jnp.pad(x, ((0, 0), (1, 1), (1, 1), (0, 0)))
    w2 = w.reshape(9 * Cin, Cout)                       # (dy, dx, ci) row-major
    b2 = b.reshape(1, Cout)

    def kernel(*refs):
        if apply_act:
            x_ref, w_ref, b_ref, sc_ref, sh_ref, y_ref, s_ref, q_ref = refs
        else:
            x_ref, w_ref, b_ref, y_ref, s_ref, q_ref = refs

        z = x_ref[0].astype(jnp.float32)                # (Hp, Wp, Cin)
        if apply_act:
            # Previous layer's BatchNorm affine + ReLU, fused into this conv.
            z = jnp.maximum(z * sc_ref[...] + sh_ref[...], 0.0)
            # Re-zero the conv halo (padding is applied to the post-ReLU map).
            hi = jax.lax.broadcasted_iota(jnp.int32, (Hp, Wp, 1), 0)
            wi = jax.lax.broadcasted_iota(jnp.int32, (Hp, Wp, 1), 1)
            interior = (hi >= 1) & (hi <= H) & (wi >= 1) & (wi <= W)
            z = jnp.where(interior, z, 0.0)

        # im2col: one (H*W, 9*Cin) patch matrix -> a single MXU matmul.
        taps = [z[dy:dy + H, dx:dx + W, :]
                for dy in range(3) for dx in range(3)]
        pat = jnp.concatenate(taps, axis=-1).reshape(H * W, 9 * Cin)
        acc = jnp.dot(pat, w_ref[...], preferred_element_type=jnp.float32)
        acc = acc + b_ref[...].astype(jnp.float32)      # (H*W, Cout)

        # BatchNorm partial statistics straight from the f32 accumulator.
        s_ref[0] = acc.sum(axis=0, keepdims=True)
        q_ref[0] = (acc * acc).sum(axis=0, keepdims=True)

        y_ref[0] = acc.reshape(H, W, Cout).astype(y_ref.dtype)

    in_specs = [
        pl.BlockSpec((1, Hp, Wp, Cin), lambda n: (n, 0, 0, 0)),
        pl.BlockSpec((9 * Cin, Cout), lambda n: (0, 0)),    # resident weights
        pl.BlockSpec((1, Cout), lambda n: (0, 0)),
    ]
    args = [xp, w2, b2]
    if apply_act:
        in_specs += [pl.BlockSpec((1, Cin), lambda n: (0, 0)),
                     pl.BlockSpec((1, Cin), lambda n: (0, 0))]
        args += [in_scale.reshape(1, Cin), in_shift.reshape(1, Cin)]

    out_shape = (
        jax.ShapeDtypeStruct((N, H, W, Cout), jnp.float32),
        jax.ShapeDtypeStruct((N, 1, Cout), jnp.float32),
        jax.ShapeDtypeStruct((N, 1, Cout), jnp.float32),
    )
    out_specs = (
        pl.BlockSpec((1, H, W, Cout), lambda n: (n, 0, 0, 0)),
        pl.BlockSpec((1, 1, Cout), lambda n: (n, 0, 0)),
        pl.BlockSpec((1, 1, Cout), lambda n: (n, 0, 0)),
    )
    # TODO(synk): for realistic UNet sizes, add a row-tile grid axis with a
    # halo (manual DMA) and bf16 inter-layer activations; whole-image blocks
    # are used here because the test sizes are tiny and fit any VMEM budget.
    return pl.pallas_call(
        kernel,
        out_shape=out_shape,
        grid=(N,),
        in_specs=in_specs,
        out_specs=out_specs,
        compiler_params=pltpu.CompilerParams(dimension_semantics=("parallel",)),
    )(*args)


# ---------------------------------------------------------------------------
# Final BatchNorm affine + ReLU, lane-dense (N, H, W*C) view
# ---------------------------------------------------------------------------
def bn_relu_lane_dense(y, scale, shift):
    N, H, W, C = y.shape
    WC = W * C
    y_flat = y.reshape(N, H, WC)                        # free row-major view
    scale_t = jnp.tile(scale, W).reshape(1, WC)         # per-lane scale (w*C + c)
    shift_t = jnp.tile(shift, W).reshape(1, WC)

    def kernel(y_ref, sc_ref, sh_ref, o_ref):
        z = y_ref[0].astype(jnp.float32) * sc_ref[...] + sh_ref[...]
        o_ref[0] = jnp.maximum(z, 0.0).astype(o_ref.dtype)

    out = pl.pallas_call(
        kernel,
        out_shape=jax.ShapeDtypeStruct((N, H, WC), jnp.float32),
        grid=(N,),
        in_specs=[pl.BlockSpec((1, H, WC), lambda n: (n, 0, 0)),
                  pl.BlockSpec((1, WC), lambda n: (0, 0)),
                  pl.BlockSpec((1, WC), lambda n: (0, 0))],
        out_specs=pl.BlockSpec((1, H, WC), lambda n: (n, 0, 0)),
        compiler_params=pltpu.CompilerParams(dimension_semantics=("parallel",)),
    )(y_flat, scale_t, shift_t)
    return out.reshape(N, H, W, C)


# ---------------------------------------------------------------------------
# DownBlock forward
# ---------------------------------------------------------------------------
def down_block_forward(x_nchw, params, pool=True):
    x = jnp.transpose(x_nchw, (0, 2, 3, 1))             # NCHW -> NHWC
    if pool:
        x = avgpool2x2(x)
    N, H, W, _ = x.shape
    cnt = float(N * H * W)

    scale = shift = None
    y = x
    for (w, b, gamma, beta) in params:
        y, psum, psq = conv3x3_bn_fused(y, w, b, scale, shift)
        s = psum.sum(axis=(0, 1))
        q = psq.sum(axis=(0, 1))
        mean = s / cnt
        # TODO(synk): E[x^2]-E[x]^2 can cancel for large-mean activations at
        # scale; a shifted / two-pass variance would be numerically safer.
        var = q / cnt - mean * mean                     # biased (BN training mode)
        scale = gamma * jax.lax.rsqrt(var + EPS)
        shift = beta - mean * scale

    out = bn_relu_lane_dense(y, scale, shift)           # last layer's BN + ReLU
    return jnp.transpose(out, (0, 3, 1, 2))             # NHWC -> NCHW


def init_params(key, input_dim, output_dim):
    """Deterministic init mirroring init_weights (kaiming fan_in/relu + trunc-normal bias)."""
    params = []
    cin = input_dim
    for _ in range(3):
        key, kw, kb = jax.random.split(key, 3)
        fan_in = cin * 3 * 3
        std = (2.0 / fan_in) ** 0.5
        w = std * jax.random.normal(kw, (3, 3, cin, output_dim), jnp.float32)  # HWIO
        b = 0.001 * jax.random.truncated_normal(kb, -2.0, 2.0, (output_dim,), jnp.float32)
        gamma = jnp.ones((output_dim,), jnp.float32)
        beta = jnp.zeros((output_dim,), jnp.float32)
        params.append((w, b, gamma, beta))
        cin = output_dim
    return params


# ---------------------------------------------------------------------------
# Pure-JAX reference (for correctness check)
# ---------------------------------------------------------------------------
def ref_forward(x_nchw, params):
    x = jax.lax.reduce_window(x_nchw, 0.0, jax.lax.add, (1, 1, 2, 2),
                              (1, 1, 2, 2), "VALID") / 4.0
    for (w, b, gamma, beta) in params:
        wk = jnp.transpose(w, (3, 2, 0, 1))             # HWIO -> OIHW
        y = jax.lax.conv_general_dilated(
            x, wk, (1, 1), ((1, 1), (1, 1)),
            dimension_numbers=("NCHW", "OIHW", "NCHW"),
            precision=jax.lax.Precision.HIGHEST)
        y = y + b[None, :, None, None]
        mean = y.mean(axis=(0, 2, 3))
        var = y.var(axis=(0, 2, 3))                     # biased
        y = (y - mean[None, :, None, None]) * jax.lax.rsqrt(
            var[None, :, None, None] + EPS)
        y = y * gamma[None, :, None, None] + beta[None, :, None, None]
        x = jnp.maximum(y, 0.0)
    return x


if __name__ == "__main__":
    key = jax.random.PRNGKey(0)
    kx, kp = jax.random.split(key)

    input_dim, output_dim = 4, 8
    x = jax.random.normal(kx, (2, input_dim, 16, 16), jnp.float32)   # NCHW
    params = init_params(kp, input_dim, output_dim)

    out = down_block_forward(x, params, pool=True)
    out = jax.block_until_ready(out)
    assert out.shape == (2, output_dim, 8, 8), out.shape

    ref = ref_forward(x, params)
    err = float(jnp.max(jnp.abs(out - ref)))
    assert err < 2e-3, f"max abs err {err}"

    print("KERNEL_OK")
</pallas_src>

<mosaic_0001>
module attributes {stable_mosaic.version = 11 : i64} {
  func.func @kernel(%arg0: i32, %arg1: memref<1x8x2x8x8xf32, #tpu.memory_space<vmem>>, %arg2: memref<1x8x8x4xf32, #tpu.memory_space<vmem>>) attributes {dimension_semantics = [#tpu.dimension_semantics<parallel>], iteration_bounds = array<i64: 2>, scalar_prefetch = 0 : i64, scratch_operands = 0 : i64, tpu.core_type = #tpu.core_type<tc>, window_params = [{transform_indices = @transform_0, window_bounds = array<i64: 1, 8, 2, 8, 8>}, {transform_indices = @transform_1, window_bounds = array<i64: 1, 8, 8, 4>}]} {
    %c0 = arith.constant 0 : index
    %c0_0 = arith.constant 0 : index
    %c0_1 = arith.constant 0 : index
    %c0_2 = arith.constant 0 : index
    %c0_3 = arith.constant 0 : index
    %0 = vector.load %arg1[%c0, %c0_0, %c0_1, %c0_2, %c0_3] : memref<1x8x2x8x8xf32, #tpu.memory_space<vmem>>, vector<1x8x2x8x8xf32>
    %1 = vector.shape_cast %0 : vector<1x8x2x8x8xf32> to vector<8x2x8x8xf32>
    %2 = vector.extract_strided_slice %1 {offsets = [0, 0, 0, 0], sizes = [8, 1, 8, 8], strides = [1, 1, 1, 1]} : vector<8x2x8x8xf32> to vector<8x1x8x8xf32>
    %3 = vector.shape_cast %2 : vector<8x1x8x8xf32> to vector<8x8x8xf32>
    %4 = vector.extract_strided_slice %1 {offsets = [0, 1, 0, 0], sizes = [8, 1, 8, 8], strides = [1, 1, 1, 1]} : vector<8x2x8x8xf32> to vector<8x1x8x8xf32>
    %5 = vector.shape_cast %4 : vector<8x1x8x8xf32> to vector<8x8x8xf32>
    %6 = arith.addf %3, %5 : vector<8x8x8xf32>
    %7 = vector.extract_strided_slice %6 {offsets = [0, 0, 0], sizes = [8, 8, 4], strides = [1, 1, 1]} : vector<8x8x8xf32> to vector<8x8x4xf32>
    %8 = vector.extract_strided_slice %6 {offsets = [0, 0, 4], sizes = [8, 8, 4], strides = [1, 1, 1]} : vector<8x8x8xf32> to vector<8x8x4xf32>
    %9 = arith.addf %7, %8 : vector<8x8x4xf32>
    %cst = arith.constant 2.500000e-01 : f32
    %10 = vector.broadcast %cst : f32 to vector<8x8x4xf32>
    %11 = arith.mulf %10, %9 : vector<8x8x4xf32>
    %c0_4 = arith.constant 0 : index
    %c0_5 = arith.constant 0 : index
    %c0_6 = arith.constant 0 : index
    %c0_7 = arith.constant 0 : index
    %12 = vector.load %arg2[%c0_4, %c0_5, %c0_6, %c0_7] : memref<1x8x8x4xf32, #tpu.memory_space<vmem>>, vector<1x8x8x4xf32>
    %13 = vector.shape_cast %12 : vector<1x8x8x4xf32> to vector<8x8x4xf32>
    %14 = vector.shape_cast %11 : vector<8x8x4xf32> to vector<1x8x8x4xf32>
    tpu.vector_store %arg2[%c0_4, %c0_5, %c0_6, %c0_7], %14 {strides = array<i32>} : memref<1x8x8x4xf32, #tpu.memory_space<vmem>>, vector<1x8x8x4xf32>,
    return
  }
  func.func @transform_0(%arg0: i32) -> (i32, i32, i32, i32, i32) {
    %c0_i32 = arith.constant 0 : i32
    %c0_i32_0 = arith.constant 0 : i32
    %c0_i32_1 = arith.constant 0 : i32
    %c0_i32_2 = arith.constant 0 : i32
    %c0_i32_3 = arith.constant 0 : i32
    return %arg0, %c0_i32, %c0_i32_0, %c0_i32_1, %c0_i32_2 : i32, i32, i32, i32, i32
  }
  func.func @transform_1(%arg0: i32) -> (i32, i32, i32, i32) {
    %c0_i32 = arith.constant 0 : i32
    %c0_i32_0 = arith.constant 0 : i32
    %c0_i32_1 = arith.constant 0 : i32
    %c0_i32_2 = arith.constant 0 : i32
    return %arg0, %c0_i32, %c0_i32_0, %c0_i32_1 : i32, i32, i32, i32
  }
}

</mosaic_0001>

<bundles_post_ra>
// kernel: tpu_custom_call.1
= control target key start
LH: loop header
LB: loop body
LE: loop exit
PB: predicated region body
PF: predicated region fallthrough
CT: control target
= control target key end

     0   :  { %6 = vsyncpa [#allocation3], 0  ;;  %s522_s0 = inlined_call_operand.hbm [shape: f32[2,8,2,8,8], index: 0, kind: input, shape index: {}]   ;;  %s523_s1 = inlined_call_operand.vmem [shape: f32[2,8,8,4], index: 1, kind: output, shape index: {}]  }
   0x1   :  { %8 = vsyncpa [#allocation3 + $0x1], 0  ;;  %s422_s6 = smov 0   ;;  %s424_s7 = smov 0  }
   0x2   :  { %s426_s8 = smov 0   ;;  %s428_s9 = smov 0  }
   0x3 LB: > { %s441_s10 = sadd.s32 4294967295, %s407_s9   ;;  %s444_s11 = sadd.s32 1, %s407_s9   ;;  %s407_s9 = sphi %s428_s9, %s530_s9   ;;  %s403_s8 = sphi %s426_s8, %s529_s8   ;;  %s399_s7 = sphi %s424_s7, %s528_s7   ;;  %s395_s6 = sphi %s422_s6, %s527_s6  }
   0x4   : > { %s18_s12 = ssub.s32 %s407_s9, %s444_s11  ;;  %s21_s13 = sadd.s32 1, %s403_s8 }
   0x5   : > { %p19_p0 = scmp.eq.s32.totalorder %s18_s12, 0  ;;  %p28_p1 = scmp.ne.s32.totalorder %s403_s8, %s399_s7 }
   0x6   : > { %p29_p2 = scmp.eq.s32.totalorder %s407_s9, 0  ;;  %p34_p3 = scmp.ne.s32.totalorder %s399_s7, %s395_s6 }
   0x7   : > { %s454_s14 = scalar_select %p19_p0, %s403_s8, %s21_s13  }
   0x8   : > { %p456_p4 = por %p29_p2, %p28_p1  ;;  %p35_p5 = scmp.eq.s32.totalorder %s441_s10, 0 }
   0x9   : > { %p307_p6 = scmp.lt.s32.totalorder %s407_s9, 2  ;;  %s84_s17 = sand.u32 1, %s403_s8  }
   0xa   : > { %p462_p7 = por %p35_p5, %p34_p3  ;;  %s290_s18 = sshll.u32 %s84_s17, 7 }
   0xb   : > { %s299_s19 = sshll.u32 %s407_s9, 7  ;;  %s88_s23 = scalar_lea.vmem [#allocation2], %s290_s18 }
   0xc   : > { %s93_s22 = scalar_lea.hbm %s522_s0, %s299_s19  ;;  %s96_s24 = sshll.u32 %s88_s23, 4  ;;  %s97_s24 = int_to_ptr.vmem [resolvable:$true] %s96_s24 }
   0xd   : > { %s94_s25 = sshll.u32 %s93_s22, 4  ;;  %p473_p8 = pnand %p307_p6, %p456_p4  ;;  %s95_s25 = int_to_ptr.hbm [resolvable:$true] %s94_s25 }
   0xe   : > { %p293_p9 = scmp.ge.s32.totalorder %s407_s9, 1  ;;  %s85_s27 = scalar_lea.sflag [#allocation3], %s84_s17 }
   0xf   : > { %s343_s28 = sshra.s32 %s95_s25, 4  ;;  %p347_p11 = pneg %p473_p8  ;;  %s344_s28 = int_to_ptr.hbm [resolvable:$true] %s343_s28 }
  0x10   : > { %s345_s29 = scalar_lea.hbm %s344_s28, 128  ;;  %s350_s3 = scalar_lea.hbm %s522_s0, 256 }
  0x11   : > { %p346_p10 = scmp.ne.s32.totalorder %s344_s28, %s345_s29  ;;  %p351_p0 = scmp.lt.s32.totalorder %s344_s28, %s522_s0 }
  0x12   : > { %p352_p1 = scmp.lt.s32.totalorder %s350_s3, %s345_s29 }
  0x13   : > { %p348_p12 = pnand %p347_p11, %p346_p10 }
  0x14   : > { %p353_p2 = por %p352_p1, %p351_p0 }
  0x15   : > { %p349_p13 = pneg %p348_p12 }
  0x17   : > { %p354_p3 = pnand %p353_p2, %p349_p13 }
  0x19   : > { %357 = shalt.err (!%p354_p3)
}
  0x1a   : > { %s409_s6 = smov 128   ;;  %s410_s12 = smov 8  }
  0x1b   : > { %306 = dma.hbm_to_vmem [thread:$0]  (!%p473_p8), %s95_s25, 2048, %s97_s24, %s85_s27, %s409_s6, %s409_s6, %s410_s12  }
  0x1c   : > { %p104_p4 = scmp.lt.s32.totalorder %s407_s9, 3 }
  0x1e   : > { %p105_p5 = pnand %p293_p9, %p104_p4 }
  0x1f   : > { %s110_s13 = sand.u32 (!%p105_p5), 1, %s399_s7  }
  0x20   : > { %108 = sbr.rel (%p105_p5) target bundleno = 178 (0xb2), region = 24  ;;  %s294_s15 = sshll.u32 (!%p105_p5), %s110_s13, 7 }
  0x21   : > { %s111_s17 = scalar_lea.sflag (!%p105_p5), [#allocation3], %s110_s13  ;;  %s114_s18 = scalar_lea.vmem (!%p105_p5), [#allocation2], %s294_s15 }
  0x25   : > { %390 = dma.done.wait (%p462_p7), %s111_s17, 2048  }
  0x26   : > { %392 = vsyncadd (%p462_p7), %s111_s17, 4294965248  ;;  %v143_v0 = vld [vmem:[%s114_s18 + $0x20] sm:$0xff]  ;;  %v144_v1 = vld [vmem:[%s114_s18 + $0x28] sm:$0xff]  ;;  %s411_s9 = smov 124   ;;  %p134_p6 = scmp.lt.s32.totalorder %s441_s10, 1  ;;  %vm211_vm0 = vcmask 31744  }
  0x27   : > { %v139_v2 = vld [vmem:[%s114_s18] sm:$0xff]  ;;  %v157_v3 = vadd.f32 %v144_v1, %v143_v0  ;;  %v140_v4 = vld [vmem:[%s114_s18 + $0x8] sm:$0xff]  ;;  %v145_v6 = vld [vmem:[%s114_s18 + $0x30] sm:$0xff] }
  0x28   : > { %v155_v5 = vadd.f32 %v140_v4, %v139_v2  ;;  %v146_v7 = vld [vmem:[%s114_s18 + $0x38] sm:$0xff]  ;;  %v147_v8 = vld [vmem:[%s114_s18 + $0x40] sm:$0xff]  ;;  %v148_v9 = vld [vmem:[%s114_s18 + $0x48] sm:$0xff]  ;;  %s532_s10 = smov (!%p134_p6, %s441_s10), 1 }
  0x29   : > { %175 = vrot.lane.b32.xlu1 %v157_v3, %s411_s9  ;;  %v141_v10 = vld [vmem:[%s114_s18 + $0x10] sm:$0xff]  ;;  %v142_v11 = vld [vmem:[%s114_s18 + $0x18] sm:$0xff]  ;;  %v159_v12 = vadd.f32 %v148_v9, %v147_v8  ;;  %v158_v13 = vadd.f32 %v146_v7, %v145_v6  ;;  %v151_v20 = vld [vmem:[%s114_s18 + $0x60] sm:$0xff]  ;;  %s300_s16 = sshll.u32 %s532_s10, 6 }
  0x2a   : > { %171 = vrot.lane.b32.xlu0 %v155_v5, %s411_s9  ;;  %v156_v14 = vadd.f32 %v142_v11, %v141_v10  ;;  %v149_v15 = vld [vmem:[%s114_s18 + $0x50] sm:$0xff]  ;;  %v150_v16 = vld [vmem:[%s114_s18 + $0x58] sm:$0xff]  ;;  %v152_v21 = vld [vmem:[%s114_s18 + $0x68] sm:$0xff]  ;;  %s138_s21 = scalar_lea.vmem %s523_s1, %s300_s16 }
  0x2b   : > { %179 = vrot.lane.b32.xlu2 %v159_v12, %s411_s9  ;;  %v160_v17 = vadd.f32 %v150_v16, %v149_v15  ;;  %v153_v18 = vld [vmem:[%s114_s18 + $0x70] sm:$0xff]  ;;  %v154_v19 = vld [vmem:[%s114_s18 + $0x78] sm:$0xff]  ;;  %v161_v23 = vadd.f32 %v152_v21, %v151_v20 }
  0x2c   : > { %v162_v22 = vadd.f32 %v154_v19, %v153_v18 }
  0x31   : > { %177 = vrot.lane.b32.xlu1 %v158_v13, %s411_s9 }
  0x32   : > { %173 = vrot.lane.b32.xlu0 %v156_v14, %s411_s9 }
  0x33   : > { %181 = vrot.lane.b32.xlu2 %v160_v17, %s411_s9 }
  0x39   : > { %185 = vrot.lane.b32.xlu1 %v162_v22, %s411_s9 }
  0x3a   : > { %183 = vrot.lane.b32.xlu0 %v161_v23, %s411_s9 }
  0x85   : > { %v180_v24 = vpop.permute.xlu2 %179 }
  0x86   : > { %v199_v25 = vadd.f32 %v180_v24, %v159_v12 }
  0x88   : > { %v207_v26 = vmul.f32 0.25, %v199_v25 }
  0x8a   : > { %216 = vst.msk [vmem:[%s138_s21 + $0x20] sm:$0xff] %vm211_vm0, %v207_v26 }
  0x8d   : > { %v182_v27 = vpop.permute.xlu2 %181 }
  0x8e   : > { %v200_v28 = vadd.f32 %v182_v27, %v160_v17 }
  0x90   : > { %v208_v29 = vmul.f32 0.25, %v200_v28 }
  0x92   : > { %217 = vst.msk [vmem:[%s138_s21 + $0x28] sm:$0xff] %vm211_vm0, %v208_v29 }
  0x9b   : > { %v176_v30 = vpop.permute.xlu1 %175 }
  0x9c   : > { %v197_v31 = vadd.f32 %v176_v30, %v157_v3  ;;  %v172_v32 = vpop.permute.xlu0 %171 }
  0x9d   : > { %v195_v33 = vadd.f32 %v172_v32, %v155_v5 }
  0x9e   : > { %v205_v34 = vmul.f32 0.25, %v197_v31 }
  0x9f   : > { %v203_v35 = vmul.f32 0.25, %v195_v33 }
  0xa0   : > { %214 = vst.msk [vmem:[%s138_s21 + $0x10] sm:$0xff] %vm211_vm0, %v205_v34 }
  0xa1   : > { %212 = vst.msk [vmem:[%s138_s21] sm:$0xff] %vm211_vm0, %v203_v35 }
  0xa3   : > { %v178_v36 = vpop.permute.xlu1 %177 }
  0xa4   : > { %v198_v37 = vadd.f32 %v178_v36, %v158_v13  ;;  %v174_v38 = vpop.permute.xlu0 %173 }
  0xa5   : > { %v196_v39 = vadd.f32 %v174_v38, %v156_v14 }
  0xa6   : > { %v206_v40 = vmul.f32 0.25, %v198_v37 }
  0xa7   : > { %v204_v41 = vmul.f32 0.25, %v196_v39 }
  0xa8   : > { %215 = vst.msk [vmem:[%s138_s21 + $0x18] sm:$0xff] %vm211_vm0, %v206_v40 }
  0xa9   : > { %213 = vst.msk [vmem:[%s138_s21 + $0x8] sm:$0xff] %vm211_vm0, %v204_v41 }
  0xab   : > { %v186_v42 = vpop.permute.xlu1 %185 }
  0xac   : > { %v202_v43 = vadd.f32 %v186_v42, %v162_v22  ;;  %v184_v44 = vpop.permute.xlu0 %183 }
  0xad   : > { %v201_v45 = vadd.f32 %v184_v44, %v161_v23 }
  0xae   : > { %v210_v46 = vmul.f32 0.25, %v202_v43 }
  0xaf   : > { %v209_v47 = vmul.f32 0.25, %v201_v45 }
  0xb0   : > { %219 = vst.msk [vmem:[%s138_s21 + $0x38] sm:$0xff] %vm211_vm0, %v210_v46 }
  0xb1   : > { %218 = vst.msk [vmem:[%s138_s21 + $0x30] sm:$0xff] %vm211_vm0, %v209_v47 }
  0xb2 PF: > { %p11_p7 = scmp.ge.s32.totalorder %s444_s11, 4   ;;  %s527_s6 = smov %s399_s7 }
  0xb3   : > { %s528_s7 = smov %s403_s8  ;;  %s529_s8 = smov %s454_s14 }
  0xb4   : > { %s530_s9 = smov %s444_s11  ;;  %13 = sbr.rel (!%p11_p7) target bundleno = 3 (0x3), region = 64 }
  0xb9   :  { %241 = vsyncpa [#allocation3], 1 }
  0xba   :  { %243 = vsyncpa [#allocation3 + $0x1], 1 }

</bundles_post_ra>
